<compile_context>
chip_gen: v6e
topology: v6e:2x2x1
jax: 0.10.0
libtpu: 0.0.40
codegen_flags: <defaults>
</compile_context>

<pallas_src>
import jax
import jax.numpy as jnp
from jax.experimental import pallas as pl
from jax.experimental.pallas import tpu as pltpu


def _round_up(x, m):
    return ((x + m - 1) // m) * m


def qnet_kernel(x_ref, w1_ref, b1_ref, wig_ref, big_ref, wh_ref, bh_ref, out_ref):
    # first_layer: Linear + ReLU  (bf16 activations/weights, f32 accumulate)
    h1 = jnp.dot(x_ref[...], w1_ref[...],
                 preferred_element_type=jnp.float32) + b1_ref[...]
    h1 = jnp.maximum(h1, 0.0)

    # single-step LSTM, zero initial state; forget gate pre-dropped on host.
    gates = jnp.dot(h1.astype(jnp.bfloat16), wig_ref[...],
                    preferred_element_type=jnp.float32) + big_ref[...]
    Hp = gates.shape[1] // 3  # padded gate width (multiple of 128)

    # sigmoid(x) == 0.5*tanh(0.5*x) + 0.5  -> one EUP op per element.
    i_g = 0.5 * jnp.tanh(0.5 * gates[:, 0:Hp]) + 0.5
    g_g = jnp.tanh(gates[:, Hp:2 * Hp])
    o_g = 0.5 * jnp.tanh(0.5 * gates[:, 2 * Hp:3 * Hp]) + 0.5
    h = o_g * jnp.tanh(i_g * g_g)

    # F.relu on the LSTM output
    h = jnp.maximum(h, 0.0)

    # dueling combine is pre-folded into (wh, bh) on the host: plain affine head.
    out_ref[...] = jnp.dot(h.astype(jnp.bfloat16), wh_ref[...],
                           preferred_element_type=jnp.float32) + bh_ref[...]


def q_network_forward(x, packed_params, *, tile_b=2048):
    """x: (batch, obs_size).  packed_params from pack_params()."""
    w1, b1, wig, big, wh, bh = packed_params
    batch, obs = x.shape
    hidden = w1.shape[1]
    three_hp = wig.shape[1]
    Hp = three_hp // 3
    n_actions = wh.shape[1]

    # x feeds a bf16 matmul anyway; cast once here (halves input HBM bytes).
    x = x.astype(jnp.bfloat16)

    # Batch tile selection:
    #  - large batch: use tile_b (rounded to a multiple of 8)
    #  - mid-size batch: split into >=2 tiles so v7x's 2nd TensorCore gets work
    #  - tiny batch: one tile equal to the batch
    tile_b = max(8, _round_up(tile_b, 8))
    if batch > tile_b:
        tb = tile_b
    elif batch >= 16:
        tb = _round_up(-(-batch // 2), 8)   # ceil(batch/2) rounded up to 8
    else:
        tb = batch
    grid = (pl.cdiv(batch, tb),)

    def whole(arr):
        # weight/bias slabs stay resident across all batch tiles
        return pl.BlockSpec(arr.shape, lambda b: (0, 0))

    flops = 2 * batch * (obs * hidden + hidden * three_hp + Hp * n_actions)
    transcendentals = 4 * batch * Hp  # 4 tanh per row over Hp lanes
    bytes_accessed = (
        x.size * 2                                    # bf16 activations in
        + w1.size * 2 + wig.size * 2 + wh.size * 2    # bf16 weights
        + b1.size * 4 + big.size * 4 + bh.size * 4    # f32 biases
        + batch * n_actions * 4                       # f32 output
    )

    cp_kwargs = dict(dimension_semantics=("parallel",))
    if tb >= 4096:
        # v5e default scoped VMEM (16 MiB) is too small for very large tiles.
        cp_kwargs["vmem_limit_bytes"] = 48 * 1024 * 1024

    return pl.pallas_call(
        qnet_kernel,
        out_shape=jax.ShapeDtypeStruct((batch, n_actions), jnp.float32),
        grid=grid,
        in_specs=[
            pl.BlockSpec((tb, obs), lambda b: (b, 0)),
            whole(w1), whole(b1),
            whole(wig), whole(big),
            whole(wh), whole(bh),
        ],
        out_specs=pl.BlockSpec((tb, n_actions), lambda b: (b, 0)),
        compiler_params=pltpu.CompilerParams(**cp_kwargs),
        cost_estimate=pl.CostEstimate(
            flops=int(flops),
            transcendentals=int(transcendentals),
            bytes_accessed=int(bytes_accessed),
        ),
    )(x, w1, b1, wig, big, wh, bh)


def make_params(key, obs_size, hidden_size, lstm_hidden, n_actions):
    """Deterministic synthetic parameters (PyTorch-style uniform init bounds),
    stored as (in, out) f32 — the un-packed logical parameterization."""
    ks = jax.random.split(key, 10)

    def u(k, shape, fan_in):
        bound = 1.0 / jnp.sqrt(jnp.float32(fan_in))
        return jax.random.uniform(k, shape, jnp.float32, -bound, bound)

    w1 = u(ks[0], (obs_size, hidden_size), obs_size)
    b1 = u(ks[1], (1, hidden_size), obs_size)
    # LSTM input weights (hidden, 4H) with PyTorch gate order i, f, g, o
    wih = u(ks[2], (hidden_size, 4 * lstm_hidden), lstm_hidden)
    bih = (u(ks[3], (1, 4 * lstm_hidden), lstm_hidden)
           + u(ks[4], (1, 4 * lstm_hidden), lstm_hidden))  # b_ih + b_hh
    wa = u(ks[5], (lstm_hidden, n_actions), lstm_hidden)
    ba = u(ks[6], (1, n_actions), lstm_hidden)
    wv = u(ks[7], (lstm_hidden, 1), lstm_hidden)
    bv = u(ks[8], (1, 1), lstm_hidden)
    return (w1, b1, wih, bih, wa, ba, wv, bv)


def pack_params(params, lstm_hidden):
    """Host-side packing:
      * drop the forget-gate quarter of the LSTM input projection (c0 == 0),
      * zero-pad each gate block to a multiple of 128 lanes,
      * fold the dueling combine (value + advantage - mean(advantage)) into a
        single affine head (wh, bh),
      * cast weight slabs to bf16 (biases stay f32)."""
    (w1, b1, wih, bih, wa, ba, wv, bv) = params
    H = lstm_hidden
    Hp = _round_up(H, 128)
    pad_w = Hp - H

    def gate_block(mat, g):
        blk = mat[:, g * H:(g + 1) * H]
        if pad_w:
            blk = jnp.pad(blk, ((0, 0), (0, pad_w)))
        return blk

    # keep (i, g, o) blocks of the (in, 4H) projection -> (in, 3*Hp)
    wig = jnp.concatenate([gate_block(wih, 0), gate_block(wih, 2), gate_block(wih, 3)], axis=1)
    big = jnp.concatenate([gate_block(bih, 0), gate_block(bih, 2), gate_block(bih, 3)], axis=1)

    # fold dueling combine:  out_j = h·(wv + wa_j − mean_k wa_k) + (bv + ba_j − mean_k ba_k)
    wh = wv + (wa - jnp.mean(wa, axis=1, keepdims=True))
    bh = bv + (ba - jnp.mean(ba, axis=1, keepdims=True))
    if pad_w:
        # padded LSTM-output lanes are exactly zero; pad head rows with zeros.
        wh = jnp.pad(wh, ((0, pad_w), (0, 0)))

    return (w1.astype(jnp.bfloat16), b1,
            wig.astype(jnp.bfloat16), big,
            wh.astype(jnp.bfloat16), bh)


def q_network_ref(x, packed_params):
    """Pure-JAX reference mirroring the kernel math (bf16 matmuls, f32 acc,
    tanh-form sigmoid, pre-folded dueling head)."""
    w1, b1, wig, big, wh, bh = packed_params
    h1 = jnp.maximum(
        jnp.dot(x.astype(jnp.bfloat16), w1, preferred_element_type=jnp.float32) + b1, 0.0)
    gates = jnp.dot(h1.astype(jnp.bfloat16), wig, preferred_element_type=jnp.float32) + big
    Hp = gates.shape[1] // 3
    i_g = 0.5 * jnp.tanh(0.5 * gates[:, :Hp]) + 0.5
    g_g = jnp.tanh(gates[:, Hp:2 * Hp])
    o_g = 0.5 * jnp.tanh(0.5 * gates[:, 2 * Hp:]) + 0.5
    h = jnp.maximum(o_g * jnp.tanh(i_g * g_g), 0.0)
    return jnp.dot(h.astype(jnp.bfloat16), wh, preferred_element_type=jnp.float32) + bh


if __name__ == "__main__":
    batch = 8
    obs_size = 32
    hidden_size = 64
    lstm_hidden = 128
    n_actions = 8

    key = jax.random.PRNGKey(0)
    kx, kp = jax.random.split(key)
    x = jax.random.normal(kx, (batch, obs_size), jnp.float32)
    params = make_params(kp, obs_size, hidden_size, lstm_hidden, n_actions)
    packed = pack_params(params, lstm_hidden)

    out = q_network_forward(x, packed)
    jax.block_until_ready(out)

    ref = q_network_ref(x, packed)
    assert out.shape == (batch, n_actions)
    assert jnp.allclose(out, ref, atol=2e-3, rtol=2e-3), "mismatch vs JAX reference"

    print("KERNEL_OK")
</pallas_src>

<mosaic_0001>
module attributes {stable_mosaic.version = 11 : i64} {
  func.func @qnet_kernel(%arg0: i32, %arg1: memref<8x32xbf16, #tpu.memory_space<vmem>>, %arg2: memref<32x64xbf16, #tpu.memory_space<vmem>>, %arg3: memref<1x64xf32, #tpu.memory_space<vmem>>, %arg4: memref<64x384xbf16, #tpu.memory_space<vmem>>, %arg5: memref<1x384xf32, #tpu.memory_space<vmem>>, %arg6: memref<128x8xbf16, #tpu.memory_space<vmem>>, %arg7: memref<1x8xf32, #tpu.memory_space<vmem>>, %arg8: memref<8x8xf32, #tpu.memory_space<vmem>>) attributes {dimension_semantics = [#tpu.dimension_semantics<parallel>], iteration_bounds = array<i64: 1>, scalar_prefetch = 0 : i64, scratch_operands = 0 : i64, tpu.core_type = #tpu.core_type<tc>, window_params = [{transform_indices = @transform_0, window_bounds = array<i64: 8, 32>}, {pipeline_mode = #tpu.pipeline_mode<synchronous>, transform_indices = @transform_1, window_bounds = array<i64: 32, 64>}, {pipeline_mode = #tpu.pipeline_mode<synchronous>, transform_indices = @transform_2, window_bounds = array<i64: 1, 64>}, {pipeline_mode = #tpu.pipeline_mode<synchronous>, transform_indices = @transform_3, window_bounds = array<i64: 64, 384>}, {pipeline_mode = #tpu.pipeline_mode<synchronous>, transform_indices = @transform_4, window_bounds = array<i64: 1, 384>}, {pipeline_mode = #tpu.pipeline_mode<synchronous>, transform_indices = @transform_5, window_bounds = array<i64: 128, 8>}, {pipeline_mode = #tpu.pipeline_mode<synchronous>, transform_indices = @transform_6, window_bounds = array<i64: 1, 8>}, {transform_indices = @transform_7, window_bounds = array<i64: 8, 8>}]} {
    %c0 = arith.constant 0 : index
    %c0_0 = arith.constant 0 : index
    %0 = vector.load %arg1[%c0, %c0_0] : memref<8x32xbf16, #tpu.memory_space<vmem>>, vector<8x32xbf16>
    %c0_1 = arith.constant 0 : index
    %c0_2 = arith.constant 0 : index
    %1 = vector.load %arg2[%c0_1, %c0_2] : memref<32x64xbf16, #tpu.memory_space<vmem>>, vector<32x64xbf16>
    %cst = arith.constant dense<0.000000e+00> : vector<8x64xf32>
    %2 = tpu.matmul %0, %1, %cst {dimension_numbers = #tpu.dot_dimension_numbers<[1], [0], [0], [1], [0, 0, 1, 1], [], []>} : vector<8x32xbf16>, vector<32x64xbf16>, vector<8x64xf32> -> vector<8x64xf32>
    %c0_3 = arith.constant 0 : index
    %c0_4 = arith.constant 0 : index
    %3 = vector.load %arg3[%c0_3, %c0_4] : memref<1x64xf32, #tpu.memory_space<vmem>>, vector<1x64xf32>
    %4 = vector.broadcast %3 : vector<1x64xf32> to vector<8x64xf32>
    %5 = arith.addf %2, %4 : vector<8x64xf32>
    %cst_5 = arith.constant 0.000000e+00 : f32
    %6 = vector.broadcast %cst_5 : f32 to vector<8x64xf32>
    %7 = arith.maximumf %5, %6 : vector<8x64xf32>
    %8 = arith.truncf %7 : vector<8x64xf32> to vector<8x64xbf16>
    %c0_6 = arith.constant 0 : index
    %c0_7 = arith.constant 0 : index
    %9 = vector.load %arg4[%c0_6, %c0_7] : memref<64x384xbf16, #tpu.memory_space<vmem>>, vector<64x384xbf16>
    %cst_8 = arith.constant dense<0.000000e+00> : vector<8x384xf32>
    %10 = tpu.matmul %8, %9, %cst_8 {dimension_numbers = #tpu.dot_dimension_numbers<[1], [0], [0], [1], [0, 0, 1, 1], [], []>} : vector<8x64xbf16>, vector<64x384xbf16>, vector<8x384xf32> -> vector<8x384xf32>
    %c0_9 = arith.constant 0 : index
    %c0_10 = arith.constant 0 : index
    %11 = vector.load %arg5[%c0_9, %c0_10] : memref<1x384xf32, #tpu.memory_space<vmem>>, vector<1x384xf32>
    %12 = vector.broadcast %11 : vector<1x384xf32> to vector<8x384xf32>
    %13 = arith.addf %10, %12 : vector<8x384xf32>
    %14 = vector.extract_strided_slice %13 {offsets = [0, 0], sizes = [8, 128], strides = [1, 1]} : vector<8x384xf32> to vector<8x128xf32>
    %cst_11 = arith.constant 5.000000e-01 : f32
    %15 = vector.broadcast %cst_11 : f32 to vector<8x128xf32>
    %16 = arith.mulf %15, %14 : vector<8x128xf32>
    %17 = math.tanh %16 : vector<8x128xf32>
    %cst_12 = arith.constant 5.000000e-01 : f32
    %18 = vector.broadcast %cst_12 : f32 to vector<8x128xf32>
    %19 = arith.mulf %18, %17 : vector<8x128xf32>
    %cst_13 = arith.constant 5.000000e-01 : f32
    %20 = vector.broadcast %cst_13 : f32 to vector<8x128xf32>
    %21 = arith.addf %19, %20 : vector<8x128xf32>
    %22 = vector.extract_strided_slice %13 {offsets = [0, 128], sizes = [8, 128], strides = [1, 1]} : vector<8x384xf32> to vector<8x128xf32>
    %23 = math.tanh %22 : vector<8x128xf32>
    %24 = vector.extract_strided_slice %13 {offsets = [0, 256], sizes = [8, 128], strides = [1, 1]} : vector<8x384xf32> to vector<8x128xf32>
    %cst_14 = arith.constant 5.000000e-01 : f32
    %25 = vector.broadcast %cst_14 : f32 to vector<8x128xf32>
    %26 = arith.mulf %25, %24 : vector<8x128xf32>
    %27 = math.tanh %26 : vector<8x128xf32>
    %cst_15 = arith.constant 5.000000e-01 : f32
    %28 = vector.broadcast %cst_15 : f32 to vector<8x128xf32>
    %29 = arith.mulf %28, %27 : vector<8x128xf32>
    %cst_16 = arith.constant 5.000000e-01 : f32
    %30 = vector.broadcast %cst_16 : f32 to vector<8x128xf32>
    %31 = arith.addf %29, %30 : vector<8x128xf32>
    %32 = arith.mulf %21, %23 : vector<8x128xf32>
    %33 = math.tanh %32 : vector<8x128xf32>
    %34 = arith.mulf %31, %33 : vector<8x128xf32>
    %cst_17 = arith.constant 0.000000e+00 : f32
    %35 = vector.broadcast %cst_17 : f32 to vector<8x128xf32>
    %36 = arith.maximumf %34, %35 : vector<8x128xf32>
    %37 = arith.truncf %36 : vector<8x128xf32> to vector<8x128xbf16>
    %c0_18 = arith.constant 0 : index
    %c0_19 = arith.constant 0 : index
    %38 = vector.load %arg6[%c0_18, %c0_19] : memref<128x8xbf16, #tpu.memory_space<vmem>>, vector<128x8xbf16>
    %cst_20 = arith.constant dense<0.000000e+00> : vector<8x8xf32>
    %39 = tpu.matmul %37, %38, %cst_20 {dimension_numbers = #tpu.dot_dimension_numbers<[1], [0], [0], [1], [0, 0, 1, 1], [], []>} : vector<8x128xbf16>, vector<128x8xbf16>, vector<8x8xf32> -> vector<8x8xf32>
    %c0_21 = arith.constant 0 : index
    %c0_22 = arith.constant 0 : index
    %40 = vector.load %arg7[%c0_21, %c0_22] : memref<1x8xf32, #tpu.memory_space<vmem>>, vector<1x8xf32>
    %41 = vector.broadcast %40 : vector<1x8xf32> to vector<8x8xf32>
    %42 = arith.addf %39, %41 : vector<8x8xf32>
    %c0_23 = arith.constant 0 : index
    %c0_24 = arith.constant 0 : index
    %43 = vector.load %arg8[%c0_23, %c0_24] : memref<8x8xf32, #tpu.memory_space<vmem>>, vector<8x8xf32>
    tpu.vector_store %arg8[%c0_23, %c0_24], %42 {strides = array<i32>} : memref<8x8xf32, #tpu.memory_space<vmem>>, vector<8x8xf32>,
    return
  }
  func.func @transform_0(%arg0: i32) -> (i32, i32) {
    %c0_i32 = arith.constant 0 : i32
    %c0_i32_0 = arith.constant 0 : i32
    return %arg0, %c0_i32 : i32, i32
  }
  func.func @transform_1(%arg0: i32) -> (i32, i32) {
    %c0_i32 = arith.constant 0 : i32
    %c0_i32_0 = arith.constant 0 : i32
    %c0_i32_1 = arith.constant 0 : i32
    return %c0_i32, %c0_i32_0 : i32, i32
  }
  func.func @transform_2(%arg0: i32) -> (i32, i32) {
    %c0_i32 = arith.constant 0 : i32
    %c0_i32_0 = arith.constant 0 : i32
    %c0_i32_1 = arith.constant 0 : i32
    return %c0_i32, %c0_i32_0 : i32, i32
  }
  func.func @transform_3(%arg0: i32) -> (i32, i32) {
    %c0_i32 = arith.constant 0 : i32
    %c0_i32_0 = arith.constant 0 : i32
    %c0_i32_1 = arith.constant 0 : i32
    return %c0_i32, %c0_i32_0 : i32, i32
  }
  func.func @transform_4(%arg0: i32) -> (i32, i32) {
    %c0_i32 = arith.constant 0 : i32
    %c0_i32_0 = arith.constant 0 : i32
    %c0_i32_1 = arith.constant 0 : i32
    return %c0_i32, %c0_i32_0 : i32, i32
  }
  func.func @transform_5(%arg0: i32) -> (i32, i32) {
    %c0_i32 = arith.constant 0 : i32
    %c0_i32_0 = arith.constant 0 : i32
    %c0_i32_1 = arith.constant 0 : i32
    return %c0_i32, %c0_i32_0 : i32, i32
  }
  func.func @transform_6(%arg0: i32) -> (i32, i32) {
    %c0_i32 = arith.constant 0 : i32
    %c0_i32_0 = arith.constant 0 : i32
    %c0_i32_1 = arith.constant 0 : i32
    return %c0_i32, %c0_i32_0 : i32, i32
  }
  func.func @transform_7(%arg0: i32) -> (i32, i32) {
    %c0_i32 = arith.constant 0 : i32
    %c0_i32_0 = arith.constant 0 : i32
    return %arg0, %c0_i32 : i32, i32
  }
}

</mosaic_0001>

<bundles_post_ra>
// kernel: tpu_custom_call.1
= control target key start
LH: loop header
LB: loop body
LE: loop exit
PB: predicated region body
PF: predicated region fallthrough
CT: control target
= control target key end

     0   :  { %12 = vsyncpa [#allocation3], 0  ;;  %s722_s0 = inlined_call_operand.vmem [shape: bf16[8,32], index: 0, kind: input, shape index: {}]   ;;  %s723_s1 = inlined_call_operand.vmem [shape: bf16[32,64], index: 1, kind: input, shape index: {}]   ;;  %s724_s2 = inlined_call_operand.vmem [shape: f32[1,64], index: 2, kind: input, shape index: {}]   ;;  %s725_s3 = inlined_call_operand.hbm [shape: bf16[64,384], index: 3, kind: input, shape index: {}]   ;;  %s726_s4 = inlined_call_operand.vmem [shape: f32[1,384], index: 4, kind: input, shape index: {}]   ;;  %s727_s5 = inlined_call_operand.vmem [shape: bf16[128,8], index: 5, kind: input, shape index: {}]   ;;  %s728_s6 = inlined_call_operand.vmem [shape: f32[1,8], index: 6, kind: input, shape index: {}]   ;;  %s729_s7 = inlined_call_operand.hbm [shape: f32[8,8], index: 7, kind: output, shape index: {}]  }
   0x1   :  { %13 = vsyncpa [#allocation4], 0  ;;  %s605_s24 = smov [#allocation2]  }
   0x2   :  { %s25_s25 = sshll.u32 %s605_s24, 4  ;;  %s26_s25 = int_to_ptr.vmem [resolvable:$true] %s25_s25 }
   0x3   :  { %s569_s26 = scalar_lea.vmem %s26_s25, 1536  ;;  %p574_p1 = scmp.lt.s32.totalorder %s26_s25, %s26_s25 }
   0x4   :  { %p570_p0 = scmp.ne.s32.totalorder %s26_s25, %s569_s26  ;;  %p575_p2 = scmp.lt.s32.totalorder %s569_s26, %s569_s26 }
   0x6   :  { %p576_p3 = por %p575_p2, %p574_p1 }
   0x8   :  { %p577_p4 = pnand %p576_p3, %p570_p0 }
   0xa   :  { %580 = shalt.err (!%p577_p4)
}
   0xb   :  { %s606_s27 = smov 192   ;;  %s607_s28 = smov 12  }
   0xc   :  { %31 = dma.hbm_to_vmem [thread:$0]  %s725_s3, 1536, %s26_s25, [#allocation3], %s606_s27, %s606_s27, %s607_s28  }
   0xd   :  { %601 = dma.done.wait [#allocation3], 1536  }
   0xe   :  { %602 = vsyncadd [#allocation3], 4294965760  ;;  %v608_v0 = vmov 0.0   ;;  %vm609_vm0 = vmmov 0   ;;  %v527_v1 = vld [vmem:[%s723_s1 + $0x8] sm:$0xff]   ;;  %v528_v2 = vld [vmem:[%s723_s1] sm:$0xff]   ;;  %v130_v33 = vlaneseq }
   0xf   :  { %480 = vmatprep.subr.bf16.mxu0 %v608_v0  ;;  %484 = vmatprep.mubr.msk.bf16.mxu0 %vm609_vm0, %v608_v0  ;;  %v531_v3 = vld [vmem:[#allocation2 + $0x4c] ss:$12 sps:$4 sm:$0xff]   ;;  %v42_v4 = vld [vmem:[%s722_s0] sm:$0xf]  ;;  %vm66_vm1 = vcmask 261120   ;;  %v610_v12 = vmov 0  }
  0x10   :  { %500 = vmatprep.subr.bf16.mxu1 %v608_v0  ;;  %516 = vmatprep.mubr.msk.bf16.mxu1 %vm609_vm0, %v608_v0  ;;  %v529_v5 = vld [vmem:[#allocation2 + $0x48] ss:$12 sps:$4 sm:$0xff]   ;;  %v532_v7 = vld [vmem:[#allocation2 + $0x30] ss:$12 sps:$4 sm:$0xff]   ;;  %v535_v9 = vld [vmem:[#allocation2 + $0x18] ss:$12 sps:$4 sm:$0xff]  }
  0x11   :  { %481 = vmatpush3.bf16.msra.mxu0 %v527_v1  ;;  %v534_v6 = vld [vmem:[#allocation2 + $0x34] ss:$12 sps:$4 sm:$0xff]   ;;  %v537_v8 = vld [vmem:[#allocation2 + $0x1c] ss:$12 sps:$4 sm:$0xff]   ;;  %v540_v10 = vld [vmem:[#allocation2 + $0x4] ss:$12 sps:$4 sm:$0xff]  }
  0x12   :  { %482 = vmatprep.subr.bf16.mxu0 %v608_v0  ;;  %v538_v11 = vld [vmem:[#allocation2] ss:$12 sps:$4 sm:$0xff]   ;;  %vm209_vm2 = vcmask 523264   ;;  %v541_v19 = vld [vmem:[#allocation2 + $0x50] ss:$12 sps:$4 sm:$0xff]   ;;  %v131_v34 = vshrl.u32 %v130_v33, 7 }
  0x13   :  { %v436_v13 = vld [vmem:[%s724_s2] ss:$0 sm:$0xff]  ;;  %v542_v22 = vld [vmem:[#allocation2 + $0x38] ss:$12 sps:$4 sm:$0xff]   ;;  %v544_v24 = vld [vmem:[#allocation2 + $0x8] ss:$12 sps:$4 sm:$0xff]  }
  0x14   :  { %v543_v23 = vld [vmem:[#allocation2 + $0x20] ss:$12 sps:$4 sm:$0xff]   ;;  %v545_v25 = vld [vmem:[%s727_s5 + $0x38] sm:$0xff]   ;;  %v546_v26 = vld [vmem:[%s727_s5 + $0x30] sm:$0xff]   ;;  %v132_v35 = vsub.s32 0, %v131_v34  ;;  %v136_v38 = vsub.s32 1, %v131_v34 }
  0x15   :  { %483 = vmatpush3.bf16.msra.mxu0 %v528_v2  ;;  %501 = vmatpush3.bf16.msra.mxu1 %v545_v25  ;;  %v547_v27 = vld [vmem:[%s727_s5 + $0x28] sm:$0xff]   ;;  %v548_v28 = vld [vmem:[%s727_s5 + $0x20] sm:$0xff]   ;;  %v549_v29 = vld [vmem:[%s727_s5 + $0x18] sm:$0xff]   ;;  %v140_v47 = vsub.s32 2, %v131_v34  ;;  %s611_s30 = smov [#allocation5]   ;;  %vm419_vm3 = vcmask 64512  }
  0x16   :  { %221 = vmatprep.subr.bf16.mxu0 %v531_v3  ;;  %502 = vmatprep.subr.bf16.mxu1 %v608_v0  ;;  %v550_v30 = vld [vmem:[%s727_s5 + $0x10] sm:$0xff]   ;;  %v551_v31 = vld [vmem:[%s727_s5 + $0x8] sm:$0xff]   ;;  %v552_v32 = vld [vmem:[%s727_s5] sm:$0xff]   ;;  %s427_s8 = sshll.u32 %s611_s30, 4  ;;  %s428_s8 = int_to_ptr.vmem [resolvable:$true] %s427_s8 }
  0x17   :  { %v128_v36 = vld [vmem:[%s726_s4] sm:$0x7]  ;;  %s581_s9 = scalar_lea.vmem %s428_s8, 128  ;;  %p586_p6 = scmp.lt.s32.totalorder %s428_s8, %s428_s8 }
  0x18   :  { %485 = vmatmul.mubr.msk.bf16.vlgmr.msra.gmra.mxu0 %vm66_vm1, %v42_v4  ;;  %v133_v37 = vrot.slane %v128_v36, %v132_v35  ;;  %v137_v41 = vrot.slane %v128_v36, %v136_v38  ;;  %v141_v48 = vrot.slane %v128_v36, %v140_v47  ;;  %v454_v3 = vld [vmem:[%s728_s6] ss:$0 sm:$0xff]  ;;  %p582_p5 = scmp.ne.s32.totalorder %s428_s8, %s581_s9  ;;  %p587_p7 = scmp.lt.s32.totalorder %s581_s9, %s581_s9 }
  0x19   :  { %222 = vmatpush1.bf16.msra.mxu0 %v529_v5  ;;  %245 = vmatprep.mubr.bf16.mxu0 %v610_v12 }
  0x1a   :  { %223 = vmatprep.subr.bf16.mxu0 %v534_v6  ;;  %503 = vmatpush3.bf16.msra.mxu1 %v546_v26  ;;  %p588_p8 = por %p587_p7, %p586_p6 }
  0x1b   :  { %504 = vmatprep.subr.bf16.mxu1 %v608_v0 }
  0x1c   :  { %p589_p9 = pnand %p588_p8, %p582_p5 }
  0x1d   :  { %224 = vmatpush1.bf16.msra.mxu0 %v532_v7 }
  0x1e   :  { %225 = vmatprep.subr.bf16.mxu0 %v537_v8  ;;  %505 = vmatpush3.bf16.msra.mxu1 %v547_v27 }
  0x1f   :  { %506 = vmatprep.subr.bf16.mxu1 %v608_v0 }
  0x21   :  { %226 = vmatpush1.bf16.msra.mxu0 %v535_v9 }
  0x22   :  { %227 = vmatprep.subr.bf16.mxu0 %v540_v10  ;;  %507 = vmatpush3.bf16.msra.mxu1 %v548_v28 }
  0x23   :  { %508 = vmatprep.subr.bf16.mxu1 %v608_v0 }
  0x25   :  { %228 = vmatpush1.bf16.msra.mxu0 %v538_v11 }
  0x26   :  { %488 = vmatprep.subr.bf16.mxu0 %v608_v0  ;;  %509 = vmatpush3.bf16.msra.mxu1 %v549_v29 }
  0x27   :  { %510 = vmatprep.subr.bf16.mxu1 %v608_v0 }
  0x2a   :  { %511 = vmatpush3.bf16.msra.mxu1 %v550_v30 }
  0x2b   :  { %512 = vmatprep.subr.bf16.mxu1 %v608_v0 }
  0x2e   :  { %513 = vmatpush3.bf16.msra.mxu1 %v551_v31 }
  0x2f   :  { %514 = vmatprep.subr.bf16.mxu1 %v608_v0 }
  0x32   :  { %515 = vmatpush3.bf16.msra.mxu1 %v552_v32 }
  0xd8   :  { %v104_v14 = vpop.f32.mrf.mxu0 }
  0xd9   :  { %v105_v15 = vadd.f32 %v436_v13, %v104_v14 }
  0xda   :  { %v486_v16 = vpop.f32.mrf.mxu0 }
  0xdb   :  { %v110_v17 = vmax.f32 %v105_v15, 0.0 }
  0xdc   :  { %v107_v18 = vpop.f32.mrf.mxu0 }
  0xdd   :  { %v111_v20 = vpack.c.bf16 %v110_v17, %v110_v17 }
  0xde   :  { %v487_v21 = vpop.f32.mrf.mxu0 }
  0xdf   :  { %452 = vmatmul.mubr.msk.bf16.vlgmr.msra.gmra.mxu0 %vm209_vm2, %v111_v20 }
  0xe0   :  { %489 = vmatpush3.bf16.msra.mxu0 %v541_v19  ;;  %496 = vmatprep.mubr.msk.bf16.mxu0 %vm609_vm0, %v608_v0 }
  0xe1   :  { %490 = vmatprep.subr.bf16.mxu0 %v608_v0 }
  0xe4   :  { %491 = vmatpush3.bf16.msra.mxu0 %v542_v22 }
  0xe5   :  { %492 = vmatprep.subr.bf16.mxu0 %v608_v0 }
  0xe8   :  { %493 = vmatpush3.bf16.msra.mxu0 %v543_v23 }
  0xe9   :  { %494 = vmatprep.subr.bf16.mxu0 %v608_v0 }
  0xec   :  { %495 = vmatpush3.bf16.msra.mxu0 %v544_v24 }
  0xef   :  { %497 = vmatmul.mubr.msk.bf16.vlgmr.msra.gmra.mxu0 %vm209_vm2, %v111_v20 }
 0x19f   :  { %v247_v39 = vpop.f32.mrf.mxu0 }
 0x1a0   :  { %v248_v40 = vadd.f32 %v247_v39, %v133_v37 }
 0x1a1   :  { %v249_v42 = vpop.f32.mrf.mxu0 }
 0x1a2   :  { %v294_v43 = vmul.f32 0.5, %v248_v40  ;;  %v250_v45 = vadd.f32 %v249_v42, %v137_v41 }
 0x1a3   :  { %v251_v44 = vpop.f32.mrf.mxu0 }
 0x1a4   :  { %553 = vtanh.f32 %v294_v43 }
 0x1a5   :  { %v252_v46 = vpop.f32.mrf.mxu0  ;;  %555 = vtanh.f32 %v250_v45 }
 0x1af   :  { %v288_v49 = vpop.f32.mrf.mxu0 }
 0x1b0   :  { %v289_v50 = vadd.f32 %v288_v49, %v141_v48 }
 0x1b1   :  { %v554_v51 = vpop.eup %553  ;;  %v498_v52 = vpop.f32.mrf.mxu0 }
 0x1b2   :  { %v296_v53 = vmul.f32 0.5, %v554_v51  ;;  %v299_v54 = vmul.f32 0.5, %v289_v50  ;;  %v556_v57 = vpop.eup %555 }
 0x1b3   :  { %v291_v55 = vpop.f32.mrf.mxu0 }
 0x1b4   :  { %v297_v56 = vadd.f32 0.5, %v296_v53  ;;  %557 = vtanh.f32 %v299_v54 }
 0x1b5   :  { %v499_v58 = vpop.f32.mrf.mxu0 }
 0x1b6   :  { %v303_v59 = vmul.f32 %v556_v57, %v297_v56 }
 0x1b8   :  { %559 = vtanh.f32 %v303_v59 }
 0x1c1   :  { %v558_v60 = vpop.eup %557 }
 0x1c2   :  { %v301_v61 = vmul.f32 0.5, %v558_v60 }
 0x1c4   :  { %v302_v62 = vadd.f32 0.5, %v301_v61 }
 0x1c5   :  { %v560_v63 = vpop.eup %559 }
 0x1c6   :  { %v305_v0 = vmul.f32 %v560_v63, %v302_v62 }
 0x1c8   :  { %v306_v1 = vmax.f32 %v305_v0, 0.0 }
 0x1ca   :  { %v307_v2 = vpack.c.bf16 %v306_v1, %v306_v1 }
 0x1cc   :  { %517 = vmatmul.mubr.bf16.vlgmr.msra.gmra.mxu1 %v307_v2 }
 0x28c   :  { %v413_v4 = vpop.f32.mrf.mxu1 }
 0x28d   :  { %v414_v5 = vadd.f32 %v454_v3, %v413_v4 }
 0x28e   :  { %v518_v6 = vpop.f32.mrf.mxu1 }
 0x28f   :  { %420 = vst.msk [vmem:[#allocation5] sm:$0xff] %vm419_vm3, %v414_v5 }
 0x290   :  { %v416_v7 = vpop.f32.mrf.mxu1 }
 0x291   :  { %592 = shalt.err (!%p589_p9)
}
 0x292   :  { %430 = dma.vmem_to_hbm [thread:$0]  %s428_s8, 128, %s729_s7, [#allocation4]   ;;  %v519_v8 = vpop.f32.mrf.mxu1 }
 0x293   :  { %603 = dma.done.wait [#allocation4], 128  }
 0x294   :  { %604 = vsyncadd [#allocation4], 4294967168 }
 0x295   :  { %434 = vsyncpa [#allocation3], 1 }
 0x296   :  { %435 = vsyncpa [#allocation4], 1 }

</bundles_post_ra>
